<compile_context>
chip_gen: v6e
topology: v6e:2x2x1
jax: 0.10.0
libtpu: 0.0.40
codegen_flags: <defaults>
</compile_context>

<pallas_src>
import jax
import jax.numpy as jnp
from jax import lax
from jax.experimental import pallas as pl
from jax.experimental.pallas import tpu as pltpu


def _pick_tile(T, q_tile):
    if q_tile is not None:
        tile = q_tile
    else:
        kind = ""
        try:
            kind = jax.devices()[0].device_kind.lower()
        except Exception:
            pass
        # v6e / v7x have a 256-wide MXU -> 256 tiles keep it full; v5e: 128.
        preferred = 256 if ("v6" in kind or "v7" in kind) else 128
        tile = min(T, preferred)
        while tile > 8 and T % tile != 0:
            tile //= 2
    assert T % tile == 0, "sequence length must be divisible by the tile size"
    return tile


def multi_head_attention(x, wq, wk, wv, wp_t, bp, *, q_tile=None):
    """Causal multi-head attention + output projection (eval-mode dropout).

    x:        [B, T, C]
    wq/wk/wv: [H, C, hs]   per-head weights, already in `x @ w` orientation
    wp_t:     [C, C]       projection weight, already transposed (cat @ wp_t)
    bp:       [1, C]       projection bias
    """
    B, T, C = x.shape
    H, C_w, hs = wq.shape
    assert C_w == C and H * hs == C, "n_heads * head_size must equal n_embd"

    tile = _pick_tile(T, q_tile)
    nt = T // tile

    # bf16 MXU operands when the input is f32; accumulation / softmax stats f32.
    compute_dtype = jnp.bfloat16 if x.dtype == jnp.float32 else x.dtype

    # Fold the (C ** -0.5) attention scale into Wq (free) and fuse Wq|Wk|Wv
    # into a single per-head [C, 3*hs] weight for the projection prologue.
    w_qkv = jnp.concatenate([wq * (C ** -0.5), wk, wv], axis=-1).astype(compute_dtype)
    # Per-head slices of the projection weight:
    #   concat_h(out_h) @ wp_t == sum_h out_h @ wp_h[h]   (no in-kernel concat).
    wp_h = wp_t.reshape(H, hs, C).astype(compute_dtype)
    x_c = x.astype(compute_dtype)

    # ------------------------------------------------------------------ #
    # Prologue: project each x row-tile exactly once -> Q, K, V [B, H, T, hs].
    # ------------------------------------------------------------------ #
    def qkv_kernel(x_ref, w_ref, q_ref, k_ref, v_ref):
        qkv = jnp.dot(x_ref[0], w_ref[0], preferred_element_type=jnp.float32)
        q_ref[0, 0] = qkv[:, :hs].astype(q_ref.dtype)
        k_ref[0, 0] = qkv[:, hs:2 * hs].astype(k_ref.dtype)
        v_ref[0, 0] = qkv[:, 2 * hs:].astype(v_ref.dtype)

    qkv_shape = jax.ShapeDtypeStruct((B, H, T, hs), compute_dtype)
    q, k, v = pl.pallas_call(
        qkv_kernel,
        out_shape=(qkv_shape, qkv_shape, qkv_shape),
        grid_spec=pltpu.PrefetchScalarGridSpec(
            num_scalar_prefetch=0,
            grid=(B, H, nt),
            in_specs=[
                pl.BlockSpec((1, tile, C), lambda b, h, t: (b, t, 0)),    # x rows
                pl.BlockSpec((1, C, 3 * hs), lambda b, h, t: (h, 0, 0)),  # Wq|Wk|Wv
            ],
            out_specs=[
                pl.BlockSpec((1, 1, tile, hs), lambda b, h, t: (b, h, t, 0)),
                pl.BlockSpec((1, 1, tile, hs), lambda b, h, t: (b, h, t, 0)),
                pl.BlockSpec((1, 1, tile, hs), lambda b, h, t: (b, h, t, 0)),
            ],
        ),
        compiler_params=pltpu.CompilerParams(
            dimension_semantics=("parallel", "parallel", "parallel")),
    )(x_c, w_qkv)

    # ------------------------------------------------------------------ #
    # Flash attention over a triangle-flattened work list (only ki <= qi).
    # Output block stays resident per (b, qi) group; written at ki == qi.
    # ------------------------------------------------------------------ #
    qi_list, ki_list = [], []
    for qi in range(nt):
        for ki in range(qi + 1):
            qi_list.append(qi)
            ki_list.append(ki)
    qi_map = jnp.asarray(qi_list, dtype=jnp.int32)
    ki_map = jnp.asarray(ki_list, dtype=jnp.int32)
    n_items = len(qi_list)

    def flash_kernel(qi_ref, ki_ref, q_ref, k_ref, v_ref, wp_ref, bp_ref,
                     o_ref, m_sc, l_sc, acc_sc):
        it = pl.program_id(1)
        qi = qi_ref[it]
        ki = ki_ref[it]

        @pl.when(ki == 0)                          # first kv block of a q-tile
        def _init():
            m_sc[...] = jnp.full(m_sc.shape, -1e30, jnp.float32)
            l_sc[...] = jnp.zeros(l_sc.shape, jnp.float32)
            acc_sc[...] = jnp.zeros(acc_sc.shape, jnp.float32)

        q_blk = q_ref[0]                           # [H, tile, hs]
        k_blk = k_ref[0]
        v_blk = v_ref[0]
        s = jnp.einsum('hqd,hkd->hqk', q_blk, k_blk,
                       preferred_element_type=jnp.float32)   # [H, tile, tile]
        # Causal mask: identity on interior (ki < qi) blocks, required on the
        # diagonal; applied unconditionally (VALU filler under the MXU).
        row = lax.broadcasted_iota(jnp.int32, s.shape, 1) + qi * tile
        col = lax.broadcasted_iota(jnp.int32, s.shape, 2) + ki * tile
        s = jnp.where(col <= row, s, jnp.float32(-1e30))

        m_prev = m_sc[...]
        m_new = jnp.maximum(m_prev, s.max(axis=-1, keepdims=True))
        alpha = jnp.exp(m_prev - m_new)
        p = jnp.exp(s - m_new)
        l_sc[...] = alpha * l_sc[...] + p.sum(axis=-1, keepdims=True)
        acc_sc[...] = alpha * acc_sc[...] + jnp.einsum(
            'hqk,hkd->hqd', p.astype(compute_dtype), v_blk,
            preferred_element_type=jnp.float32)
        m_sc[...] = m_new

        @pl.when(ki == qi)                         # diagonal block: finalize
        def _finalize():
            # Exact divide once per q-tile (negligible cost, exact softmax).
            out_h = (acc_sc[...] / l_sc[...]).astype(compute_dtype)  # [H,tile,hs]
            proj = jnp.dot(out_h[0], wp_ref[0],
                           preferred_element_type=jnp.float32)       # [tile, C]
            for hh in range(1, H):                 # static unroll, register adds
                proj = proj + jnp.dot(out_h[hh], wp_ref[hh],
                                      preferred_element_type=jnp.float32)
            o_ref[0] = (proj + bp_ref[...].astype(jnp.float32)).astype(o_ref.dtype)

    return pl.pallas_call(
        flash_kernel,
        out_shape=jax.ShapeDtypeStruct((B, T, C), x.dtype),
        grid_spec=pltpu.PrefetchScalarGridSpec(
            num_scalar_prefetch=2,
            grid=(B, n_items),
            in_specs=[
                pl.BlockSpec((1, H, tile, hs), lambda b, t, qm, km: (b, 0, qm[t], 0)),  # Q
                pl.BlockSpec((1, H, tile, hs), lambda b, t, qm, km: (b, 0, km[t], 0)),  # K
                pl.BlockSpec((1, H, tile, hs), lambda b, t, qm, km: (b, 0, km[t], 0)),  # V
                pl.BlockSpec((H, hs, C), lambda b, t, qm, km: (0, 0, 0)),               # Wp per head
                pl.BlockSpec((1, C), lambda b, t, qm, km: (0, 0)),                      # proj bias
            ],
            out_specs=pl.BlockSpec((1, tile, C), lambda b, t, qm, km: (b, qm[t], 0)),
            scratch_shapes=[
                pltpu.VMEM((H, tile, 1), jnp.float32),    # running max m
                pltpu.VMEM((H, tile, 1), jnp.float32),    # running denom l
                pltpu.VMEM((H, tile, hs), jnp.float32),   # running numerator
            ],
        ),
        compiler_params=pltpu.CompilerParams(
            dimension_semantics=("parallel", "arbitrary"),
            vmem_limit_bytes=48 * 1024 * 1024,   # safe on v7x (64 MiB physical)
        ),
    )(qi_map, ki_map, q, k, v, wp_h, bp)


def reference_mha(x, wq, wk, wv, wp_t, bp):
    """Pure-JAX reference replicating the PyTorch forward (dropout=identity)."""
    B, T, C = x.shape
    scale = C ** (-0.5)
    q = jnp.einsum('btc,hcs->bhts', x, wq)
    k = jnp.einsum('btc,hcs->bhts', x, wk)
    v = jnp.einsum('btc,hcs->bhts', x, wv)
    wei = jnp.einsum('bhts,bhus->bhtu', q, k) * scale
    mask = jnp.tril(jnp.ones((T, T), dtype=bool))
    wei = jnp.where(mask[None, None], wei, -jnp.inf)
    wei = jax.nn.softmax(wei, axis=-1)
    out = jnp.einsum('bhtu,bhus->bhts', wei, v)           # [B, H, T, hs]
    out = jnp.transpose(out, (0, 2, 1, 3)).reshape(B, T, C)
    return out @ wp_t + bp


def _make_params(key, n_heads, head_size, n_embd):
    kq, kk, kv, kp, kb = jax.random.split(key, 5)
    bound = 1.0 / jnp.sqrt(jnp.float32(n_embd))
    wq = jax.random.uniform(kq, (n_heads, n_embd, head_size),
                            minval=-bound, maxval=bound, dtype=jnp.float32)
    wk = jax.random.uniform(kk, (n_heads, n_embd, head_size),
                            minval=-bound, maxval=bound, dtype=jnp.float32)
    wv = jax.random.uniform(kv, (n_heads, n_embd, head_size),
                            minval=-bound, maxval=bound, dtype=jnp.float32)
    wp_t = jax.random.uniform(kp, (n_embd, n_embd),
                              minval=-bound, maxval=bound, dtype=jnp.float32)
    bp = jax.random.uniform(kb, (1, n_embd),
                            minval=-bound, maxval=bound, dtype=jnp.float32)
    return wq, wk, wv, wp_t, bp


if __name__ == "__main__":
    key = jax.random.PRNGKey(0)
    kparam, kx1, kx2 = jax.random.split(key, 3)

    n_heads, head_size = 4, 8
    n_embd = n_heads * head_size          # 32
    wq, wk, wv, wp_t, bp = _make_params(kparam, n_heads, head_size, n_embd)

    # bf16 MXU operands + flash recombination vs. exact f32 reference.
    TOL = 2e-2

    # --- Test 1: tiny shapes (single tile, single work item) -----------------
    B, T = 2, 8
    x = jax.random.normal(kx1, (B, T, n_embd), dtype=jnp.float32)
    out = jax.block_until_ready(multi_head_attention(x, wq, wk, wv, wp_t, bp))
    ref = reference_mha(x, wq, wk, wv, wp_t, bp)
    assert out.shape == (B, T, n_embd)
    assert jnp.allclose(out, ref, atol=TOL, rtol=TOL), "mismatch (T=8) vs JAX reference"

    # --- Test 2: multi-tile flash path (triangle work list, interior blocks) -
    B2, T2 = 2, 256
    x2 = jax.random.normal(kx2, (B2, T2, n_embd), dtype=jnp.float32)
    out2 = jax.block_until_ready(
        multi_head_attention(x2, wq, wk, wv, wp_t, bp, q_tile=128))
    ref2 = reference_mha(x2, wq, wk, wv, wp_t, bp)
    assert out2.shape == (B2, T2, n_embd)
    assert jnp.allclose(out2, ref2, atol=TOL, rtol=TOL), "mismatch (T=256) vs JAX reference"

    # --- Test 3: auto tile selection (128 on v5e, 256 on v6e/v7x) ------------
    out3 = jax.block_until_ready(multi_head_attention(x2, wq, wk, wv, wp_t, bp))
    assert jnp.allclose(out3, ref2, atol=TOL, rtol=TOL), "mismatch (auto tile) vs JAX reference"

    print("KERNEL_OK")
</pallas_src>

<mosaic_0001>
module attributes {stable_mosaic.version = 11 : i64} {
  func.func @qkv_kernel(%arg0: i32, %arg1: i32, %arg2: i32, %arg3: memref<1x8x32xbf16, #tpu.memory_space<vmem>>, %arg4: memref<1x32x24xbf16, #tpu.memory_space<vmem>>, %arg5: memref<1x1x8x8xbf16, #tpu.memory_space<vmem>>, %arg6: memref<1x1x8x8xbf16, #tpu.memory_space<vmem>>, %arg7: memref<1x1x8x8xbf16, #tpu.memory_space<vmem>>) attributes {dimension_semantics = [#tpu.dimension_semantics<parallel>, #tpu.dimension_semantics<parallel>, #tpu.dimension_semantics<parallel>], iteration_bounds = array<i64: 2, 4, 1>, scalar_prefetch = 0 : i64, scratch_operands = 0 : i64, tpu.core_type = #tpu.core_type<tc>, window_params = [{transform_indices = @transform_0, window_bounds = array<i64: 1, 8, 32>}, {transform_indices = @transform_1, window_bounds = array<i64: 1, 32, 24>}, {transform_indices = @transform_2, window_bounds = array<i64: 1, 1, 8, 8>}, {transform_indices = @transform_3, window_bounds = array<i64: 1, 1, 8, 8>}, {transform_indices = @transform_4, window_bounds = array<i64: 1, 1, 8, 8>}]} {
    %c0 = arith.constant 0 : index
    %c0_0 = arith.constant 0 : index
    %c0_1 = arith.constant 0 : index
    %0 = vector.load %arg3[%c0, %c0_0, %c0_1] : memref<1x8x32xbf16, #tpu.memory_space<vmem>>, vector<1x8x32xbf16>
    %1 = vector.shape_cast %0 : vector<1x8x32xbf16> to vector<8x32xbf16>
    %c0_2 = arith.constant 0 : index
    %c0_3 = arith.constant 0 : index
    %c0_4 = arith.constant 0 : index
    %2 = vector.load %arg4[%c0_2, %c0_3, %c0_4] : memref<1x32x24xbf16, #tpu.memory_space<vmem>>, vector<1x32x24xbf16>
    %3 = vector.shape_cast %2 : vector<1x32x24xbf16> to vector<32x24xbf16>
    %cst = arith.constant dense<0.000000e+00> : vector<8x24xf32>
    %4 = tpu.matmul %1, %3, %cst {dimension_numbers = #tpu.dot_dimension_numbers<[1], [0], [0], [1], [0, 0, 1, 1], [], []>} : vector<8x32xbf16>, vector<32x24xbf16>, vector<8x24xf32> -> vector<8x24xf32>
    %5 = vector.extract_strided_slice %4 {offsets = [0, 0], sizes = [8, 8], strides = [1, 1]} : vector<8x24xf32> to vector<8x8xf32>
    %6 = arith.truncf %5 : vector<8x8xf32> to vector<8x8xbf16>
    %c0_5 = arith.constant 0 : index
    %c0_6 = arith.constant 0 : index
    %c0_7 = arith.constant 0 : index
    %c0_8 = arith.constant 0 : index
    %7 = vector.load %arg5[%c0_5, %c0_6, %c0_7, %c0_8] : memref<1x1x8x8xbf16, #tpu.memory_space<vmem>>, vector<1x1x8x8xbf16>
    %8 = vector.shape_cast %7 : vector<1x1x8x8xbf16> to vector<8x8xbf16>
    %9 = vector.shape_cast %6 : vector<8x8xbf16> to vector<1x1x8x8xbf16>
    tpu.vector_store %arg5[%c0_5, %c0_6, %c0_7, %c0_8], %9 {strides = array<i32>} : memref<1x1x8x8xbf16, #tpu.memory_space<vmem>>, vector<1x1x8x8xbf16>,
    %10 = vector.extract_strided_slice %4 {offsets = [0, 8], sizes = [8, 8], strides = [1, 1]} : vector<8x24xf32> to vector<8x8xf32>
    %11 = arith.truncf %10 : vector<8x8xf32> to vector<8x8xbf16>
    %c0_9 = arith.constant 0 : index
    %c0_10 = arith.constant 0 : index
    %c0_11 = arith.constant 0 : index
    %c0_12 = arith.constant 0 : index
    %12 = vector.load %arg6[%c0_9, %c0_10, %c0_11, %c0_12] : memref<1x1x8x8xbf16, #tpu.memory_space<vmem>>, vector<1x1x8x8xbf16>
    %13 = vector.shape_cast %12 : vector<1x1x8x8xbf16> to vector<8x8xbf16>
    %14 = vector.shape_cast %11 : vector<8x8xbf16> to vector<1x1x8x8xbf16>
    tpu.vector_store %arg6[%c0_9, %c0_10, %c0_11, %c0_12], %14 {strides = array<i32>} : memref<1x1x8x8xbf16, #tpu.memory_space<vmem>>, vector<1x1x8x8xbf16>,
    %15 = vector.extract_strided_slice %4 {offsets = [0, 16], sizes = [8, 8], strides = [1, 1]} : vector<8x24xf32> to vector<8x8xf32>
    %16 = arith.truncf %15 : vector<8x8xf32> to vector<8x8xbf16>
    %c0_13 = arith.constant 0 : index
    %c0_14 = arith.constant 0 : index
    %c0_15 = arith.constant 0 : index
    %c0_16 = arith.constant 0 : index
    %17 = vector.load %arg7[%c0_13, %c0_14, %c0_15, %c0_16] : memref<1x1x8x8xbf16, #tpu.memory_space<vmem>>, vector<1x1x8x8xbf16>
    %18 = vector.shape_cast %17 : vector<1x1x8x8xbf16> to vector<8x8xbf16>
    %19 = vector.shape_cast %16 : vector<8x8xbf16> to vector<1x1x8x8xbf16>
    tpu.vector_store %arg7[%c0_13, %c0_14, %c0_15, %c0_16], %19 {strides = array<i32>} : memref<1x1x8x8xbf16, #tpu.memory_space<vmem>>, vector<1x1x8x8xbf16>,
    return
  }
  func.func @transform_0(%arg0: i32, %arg1: i32, %arg2: i32) -> (i32, i32, i32) {
    %c0_i32 = arith.constant 0 : i32
    %c0_i32_0 = arith.constant 0 : i32
    return %arg0, %arg2, %c0_i32 : i32, i32, i32
  }
  func.func @transform_1(%arg0: i32, %arg1: i32, %arg2: i32) -> (i32, i32, i32) {
    %c0_i32 = arith.constant 0 : i32
    %c0_i32_0 = arith.constant 0 : i32
    %c0_i32_1 = arith.constant 0 : i32
    return %arg1, %c0_i32, %c0_i32_0 : i32, i32, i32
  }
  func.func @transform_2(%arg0: i32, %arg1: i32, %arg2: i32) -> (i32, i32, i32, i32) {
    %c0_i32 = arith.constant 0 : i32
    %c0_i32_0 = arith.constant 0 : i32
    return %arg0, %arg1, %arg2, %c0_i32 : i32, i32, i32, i32
  }
  func.func @transform_3(%arg0: i32, %arg1: i32, %arg2: i32) -> (i32, i32, i32, i32) {
    %c0_i32 = arith.constant 0 : i32
    %c0_i32_0 = arith.constant 0 : i32
    return %arg0, %arg1, %arg2, %c0_i32 : i32, i32, i32, i32
  }
  func.func @transform_4(%arg0: i32, %arg1: i32, %arg2: i32) -> (i32, i32, i32, i32) {
    %c0_i32 = arith.constant 0 : i32
    %c0_i32_0 = arith.constant 0 : i32
    return %arg0, %arg1, %arg2, %c0_i32 : i32, i32, i32, i32
  }
}

</mosaic_0001>

<bundles_post_ra>
// kernel: tpu_custom_call.1
= control target key start
LH: loop header
LB: loop body
LE: loop exit
PB: predicated region body
PF: predicated region fallthrough
CT: control target
= control target key end

     0   :  { %10 = vsyncpa [#allocation3], 0  ;;  %s1087_s0 = inlined_call_operand.vmem [shape: bf16[2,8,32], index: 0, kind: input, shape index: {}]   ;;  %s1088_s1 = inlined_call_operand.vmem [shape: bf16[4,32,24], index: 1, kind: input, shape index: {}]   ;;  %s1089_s2 = inlined_call_operand.hbm [shape: bf16[2,4,8,8], index: 2, kind: output, shape index: {0}]   ;;  %s1090_s3 = inlined_call_operand.hbm [shape: bf16[2,4,8,8], index: 3, kind: output, shape index: {1}]   ;;  %s1091_s4 = inlined_call_operand.hbm [shape: bf16[2,4,8,8], index: 4, kind: output, shape index: {2}]  }
   0x1   :  { %12 = vsyncpa [#allocation3 + $0x1], 0 }
   0x2   :  { %13 = vsyncpa [#allocation5], 0 }
   0x3   :  { %15 = vsyncpa [#allocation5 + $0x1], 0  ;;  %s874_s15 = smov 0   ;;  %s876_s16 = smov 0  }
   0x4   :  { %s878_s17 = smov 0   ;;  %s880_s18 = smov 0  }
   0x5   :  { %s882_s19 = smov 0   ;;  %s884_s20 = smov 0  }
   0x6   :  { %s886_s21 = smov 0   ;;  %s888_s22 = smov 0  }
   0x7 LB: > { %s566_s23 = sadd.s32 4294967295, %s840_s22   ;;  %s1092_s24 = sadd.s32 4294967294, %s840_s22   ;;  %s840_s22 = sphi %s888_s22, %s21_s22   ;;  %s836_s21 = sphi %s886_s21, %s1106_s21   ;;  %s832_s20 = sphi %s884_s20, %s1105_s20   ;;  %s828_s19 = sphi %s882_s19, %s1104_s19   ;;  %s824_s18 = sphi %s880_s18, %s1103_s18   ;;  %s820_s17 = sphi %s878_s17, %s1102_s17   ;;  %s816_s16 = sphi %s876_s16, %s1101_s16   ;;  %s812_s15 = sphi %s874_s15, %s1100_s15  }
   0x8   : > { %s36_s25 = sadd.s32 1, %s832_s20  ;;  %s40_s26 = sadd.s32 1, %s836_s21 }
   0x9   : > { %p38_p0 = scmp.ge.s32.totalorder %s36_s25, 4  ;;  %p115_p1 = scmp.ne.s32.totalorder %s820_s17, %s816_s16 }
   0xa   : > { %p116_p2 = scmp.eq.s32.totalorder %s566_s23, 7  ;;  %p121_p5 = scmp.ne.s32.totalorder %s816_s16, %s812_s15 }
   0xb   : > { %s1108_s25 = smov (%p38_p0, %s36_s25), 0  ;;  %s1110_s26 = smov (!%p38_p0, %s40_s26), %s836_s21 }
   0xc   : > { %s99_s27 = ssub.s32 %s832_s20, %s1108_s25  ;;  %p927_p3 = por %p116_p2, %p115_p1 }
   0xd   : > { %p42_p4 = scmp.ge.s32.totalorder %s1110_s26, 2  ;;  %p122_p6 = scmp.eq.s32.totalorder %s1092_s24, 7 }
   0xe   : > { %p570_p7 = scmp.ge.s32.totalorder %s840_s22, 1  ;;  %p218_p9 = scmp.lt.s32.totalorder %s840_s22, 9 }
   0xf   : > { %s1112_s26 = smov (%p42_p4, %s1110_s26), 0  ;;  %p938_p8 = por %p122_p6, %p121_p5 }
  0x10   : > { %s98_s30 = ssub.s32 %s836_s21, %s1112_s26  ;;  %s105_s5 = sadd.s32 1, %s820_s17 }
  0x11   : > { %s100_s6 = sor.u32 %s99_s27, %s98_s30  ;;  %p219_p10 = pnand %p570_p7, %p218_p9 }
  0x12   : > { %p103_p11 = scmp.eq.s32.totalorder %s100_s6, 0  ;;  %p268_p12 = scmp.lt.s32.totalorder (!%p219_p10), %s824_s18, 3 }
  0x13   : > { %222 = sbr.rel (%p219_p10) target bundleno = 383 (0x17f), region = 28  ;;  %p261_p13 = scmp.lt.s32.totalorder (!%p219_p10), %s828_s19, 1 }
  0x14   : > { %s947_s7 = scalar_select %p103_p11, %s820_s17, %s105_s5  }
  0x15   : > { %s244_s6 = sand.u32 (!%p219_p10), 1, %s816_s16   ;;  %s584_s24 = sshll.u32 (!%p219_p10), %s828_s19, 2 }
  0x16   : > { %s372_s11 = sadd.s32 (!%p219_p10), %s824_s18, %s584_s24  ;;  %s845_s30 = smov (!%p219_p10), [#allocation2]  }
  0x18   : > { %v842_v0 = vmov 0.0   ;;  %vm843_vm0 = vmmov 0   ;;  %s269_s8 = scalar_select %p268_p12, %s824_s18, 3  ;;  %vm291_vm1 = vcmask 261120   ;;  %vm336_vm2 = vcmask 60416  }
  0x19   : > { %597 = vmatprep.subr.bf16.mxu0 %v842_v0  ;;  %601 = vmatprep.mubr.msk.bf16.mxu0 %vm843_vm0, %v842_v0  ;;  %s262_s9 = scalar_select %p261_p13, %s828_s19, 1 }
  0x1a   : > { %s592_s10 = sshll.u32 %s269_s8, 4  ;;  %s961_s8 = sshll.u32 %s244_s6, 2 }
  0x1b   : > { %s272_s13 = scalar_lea.vmem %s1088_s1, %s592_s10  ;;  %s574_s14 = sshll.u32 %s262_s9, 2 }
  0x1c   : > { %v690_v1 = vld [vmem:[%s272_s13 + $0x8] sm:$0xff]   ;;  %v691_v2 = vld [vmem:[%s272_s13] sm:$0xff]   ;;  %s267_s5 = scalar_lea.vmem %s1087_s0, %s574_s14  ;;  %s964_s10 = sshll.u32 %s372_s11, 6 }
  0x1d   : > { %598 = vmatpush3.bf16.msra.mxu0 %v690_v1  ;;  %v274_v3 = vld [vmem:[%s267_s5] sm:$0xf]  ;;  %s246_s9 = scalar_lea.vmem [#allocation2], %s961_s8  ;;  %s971_s27 = scalar_lea.hbm %s1089_s2, %s964_s10 }
  0x1e   : > { %599 = vmatprep.subr.bf16.mxu0 %v842_v0  ;;  %s376_s12 = sshll.u32 %s246_s9, 4  ;;  %s844_s18 = smov 120   ;;  %s973_s12 = int_to_ptr.vmem [resolvable:$true] %s376_s12 }
  0x1f   : > { %s350_s19 = scalar_lea.sflag [#allocation3], %s244_s6  ;;  %s692_s24 = scalar_lea.vmem %s973_s12, 64 }
  0x20   : > { %p693_p0 = scmp.ne.s32.totalorder %s973_s12, %s692_s24  ;;  %s696_s5 = sshll.u32 %s845_s30, 4  ;;  %s697_s5 = int_to_ptr.vmem [resolvable:$false] %s696_s5 }
  0x21   : > { %600 = vmatpush3.bf16.msra.mxu0 %v691_v2  ;;  %s698_s11 = scalar_lea.vmem %s697_s5, 128  ;;  %p699_p4 = scmp.lt.s32.totalorder %s973_s12, %s697_s5 }
  0x22   : > { %p694_p1 = pnand %p693_p0, %p927_p3  ;;  %p700_p5 = scmp.lt.s32.totalorder %s698_s11, %s692_s24 }
  0x24   : > { %602 = vmatmul.mubr.msk.bf16.vlgmr.msra.gmra.mxu0 %vm291_vm1, %v274_v3  ;;  %p695_p2 = pneg %p694_p1  ;;  %p701_p6 = por %p700_p5, %p699_p4 }
  0x26   : > { %p702_p7 = pnand %p701_p6, %p695_p2 }
  0xe4   : > { %v329_v4 = vpop.f32.mrf.mxu0 }
  0xe5   : > { %v335_v5 = vpack.c.bf16 %v329_v4, %v329_v4 }
  0xe6   : > { %v603_v6 = vpop.f32.mrf.mxu0 }
  0xe7   : > { %341 = vrot.lane.b32.xlu0 %v335_v5, %s844_s18  ;;  %337 = vst.msk [vmem:[%s246_s9] sm:$0xf] %vm336_vm2, %v335_v5 }
  0xe8   : > { %v332_v7 = vpop.f32.mrf.mxu0 }
  0xe9   : > { %705 = shalt.err (!%p702_p7)
}
  0xea   : > { %s706_s9 = scalar_lea.hbm %s971_s27, 64  ;;  %s710_s14 = scalar_lea.hbm %s1089_s2, 512 }
  0xeb   : > { %p707_p9 = scmp.ne.s32.totalorder %s971_s27, %s706_s9  ;;  %p711_p12 = scmp.lt.s32.totalorder %s971_s27, %s1089_s2 }
  0xec   : > { %p712_p13 = scmp.lt.s32.totalorder %s710_s14, %s706_s9 }
  0xed   : > { %p708_p10 = pnand %p707_p9, %p927_p3 }
  0xee   : > { %p713_p0 = por %p712_p13, %p711_p12 }
  0xef   : > { %p709_p11 = pneg %p708_p10 }
  0xf1   : > { %p714_p1 = pnand %p713_p0, %p709_p11 }
  0xf3   : > { %717 = shalt.err (!%p714_p1)
}
  0xf4   : > { %605 = dma.vmem_to_hbm [thread:$0]  (%p927_p3), %s973_s12, 64, %s971_s27, %s350_s19   ;;  %v604_v8 = vpop.f32.mrf.mxu0 }
  0xf5   : > { %s846_s24 = smov 112   ;;  %s998_s5 = sand.u32 1, %s566_s23  }
  0xf6   : > { %345 = vrot.lane.b32.xlu0 %v335_v5, %s846_s24  ;;  %s253_s11 = scalar_lea.vmem [#allocation4], %s961_s8  ;;  %s1005_s14 = scalar_lea.hbm %s1090_s3, %s964_s10 }
  0xf7   : > { %s392_s9 = sshll.u32 %s253_s11, 4  ;;  %s1093_s12 = scalar_lea.vmem [#allocation6], %s961_s8  ;;  %s1007_s9 = int_to_ptr.vmem [resolvable:$true] %s392_s9 }
  0xf8   : > { %s408_s27 = sshll.u32 %s1093_s12, 4  ;;  %s718_s19 = scalar_lea.vmem %s1007_s9, 64  ;;  %s409_s27 = int_to_ptr.vmem [resolvable:$true] %s408_s27 }
  0xf9   : > { %p719_p2 = scmp.ne.s32.totalorder %s1007_s9, %s718_s19  ;;  %s847_s18 = smov [#allocation4]  }
  0xfa   : > { %s722_s30 = sshll.u32 %s847_s18, 4  ;;  %s723_s30 = int_to_ptr.vmem [resolvable:$false] %s722_s30 }
  0xfb   : > { %p720_p4 = pnand %p719_p2, %p927_p3  ;;  %s724_s24 = scalar_lea.vmem %s723_s30, 128 }
  0xfc   : > { %p725_p6 = scmp.lt.s32.totalorder %s1007_s9, %s723_s30  ;;  %p726_p7 = scmp.lt.s32.totalorder %s724_s24, %s718_s19 }
  0xfd   : > { %p721_p5 = pneg %p720_p4 }
  0xfe   : > { %p727_p9 = por %p726_p7, %p725_p6 }
 0x100   : > { %p728_p10 = pnand %p727_p9, %p721_p5 }
 0x159   : > { %v342_v9 = vpop.permute.xlu0 %341 }
 0x15a   : > { %344 = vst.msk [vmem:[%s253_s11] sm:$0xf] %vm336_vm2, %v342_v9 }
 0x15b   : > { %731 = shalt.err (!%p728_p10)
}
 0x15c   : > { %s732_s11 = scalar_lea.hbm %s1005_s14, 64  ;;  %s736_s18 = scalar_lea.hbm %s1090_s3, 512 }
 0x15d   : > { %p733_p11 = scmp.ne.s32.totalorder %s1005_s14, %s732_s11  ;;  %p737_p0 = scmp.lt.s32.totalorder %s1005_s14, %s1090_s3 }
 0x15e   : > { %p738_p1 = scmp.lt.s32.totalorder %s736_s18, %s732_s11 }
 0x15f   : > { %p734_p12 = pnand %p733_p11, %p927_p3 }
 0x160   : > { %p739_p2 = por %p738_p1, %p737_p0 }
 0x161   : > { %p735_p13 = pneg %p734_p12 }
 0x163   : > { %p740_p4 = pnand %p739_p2, %p735_p13 }
 0x165   : > { %743 = shalt.err (!%p740_p4)
}
 0x166   : > { %s1096_s19 = scalar_lea.sflag [#allocation5], %s998_s5  ;;  %s406_s12 = scalar_lea.hbm %s1091_s4, %s964_s10 }
 0x167   : > { %606 = dma.vmem_to_hbm [thread:$0]  (%p927_p3), %s1007_s9, 64, %s1005_s14, %s1096_s19  }
 0x168   : > { %v346_v10 = vpop.permute.xlu0 %345  ;;  %s1097_s23 = scalar_lea.vmem [#allocation6], %s961_s8  ;;  %s744_s11 = scalar_lea.vmem %s409_s27, 64 }
 0x169   : > { %348 = vst.msk [vmem:[%s1097_s23] sm:$0xf] %vm336_vm2, %v346_v10  ;;  %p745_p5 = scmp.ne.s32.totalorder %s409_s27, %s744_s11  ;;  %s848_s6 = smov [#allocation6]  }
 0x16a   : > { %s748_s13 = sshll.u32 %s848_s6, 4  ;;  %s749_s13 = int_to_ptr.vmem [resolvable:$false] %s748_s13 }
 0x16b   : > { %p746_p6 = pnand %p745_p5, %p927_p3  ;;  %s750_s18 = scalar_lea.vmem %s749_s13, 128 }
 0x16c   : > { %p751_p9 = scmp.lt.s32.totalorder %s409_s27, %s749_s13  ;;  %p752_p10 = scmp.lt.s32.totalorder %s750_s18, %s744_s11 }
 0x16d   : > { %p747_p7 = pneg %p746_p6 }
 0x16e   : > { %p753_p11 = por %p752_p10, %p751_p9 }
 0x170   : > { %p754_p12 = pnand %p753_p11, %p747_p7 }
 0x172   : > { %757 = shalt.err (!%p754_p12)
}
 0x173   : > { %s758_s9 = scalar_lea.hbm %s406_s12, 64  ;;  %s762_s14 = scalar_lea.hbm %s1091_s4, 512 }
 0x174   : > { %p759_p13 = scmp.ne.s32.totalorder %s406_s12, %s758_s9  ;;  %p763_p2 = scmp.lt.s32.totalorder %s406_s12, %s1091_s4 }
 0x175   : > { %p764_p4 = scmp.lt.s32.totalorder %s762_s14, %s758_s9 }
 0x176   : > { %p760_p0 = pnand %p759_p13, %p927_p3 }
 0x177   : > { %p765_p5 = por %p764_p4, %p763_p2 }
 0x178   : > { %p761_p1 = pneg %p760_p0 }
 0x17a   : > { %p766_p6 = pnand %p765_p5, %p761_p1 }
 0x17c   : > { %769 = shalt.err (!%p766_p6)
}
 0x17d   : > { %s1098_s24 = scalar_lea.sflag [#allocation5], %s998_s5 }
 0x17e   : > { %607 = dma.vmem_to_hbm [thread:$0]  (%p927_p3), %s409_s27, 64, %s406_s12, %s1098_s24  }
 0x17f PF: > { %p621_p7 = scmp.ge.s32.totalorder %s840_s22, 2  ;;  %s420_s23 = sand.u32 1, %s812_s15  }
 0x180   : > { %s421_s11 = scalar_lea.sflag [#allocation3], %s420_s23 }
 0x181   : > { %p612_p9 = pnand %p621_p7, %p938_p8 }
 0x183   : > { %p613_p10 = pneg %p612_p9 }
 0x185   : > { %803 = dma.done.wait (%p613_p10), %s421_s11, 64  }
 0x186   : > { %805 = vsyncadd (%p613_p10), %s421_s11, 4294967232  ;;  %s1099_s6 = sadd.s32 4294967294, %s840_s22  }
 0x187   : > { %s429_s13 = sand.u32 1, %s1099_s6  }
 0x188   : > { %s430_s18 = scalar_lea.sflag [#allocation5], %s429_s13 }
 0x189   : > { %807 = dma.done.wait (%p613_p10), %s430_s18, 128  }
 0x18a   : > { %809 = vsyncadd (%p613_p10), %s430_s18, 4294967168  ;;  %s21_s22 = sadd.s32 1, %s840_s22   ;;  %s1100_s15 = smov %s816_s16 }
 0x18b   : > { %p18_p3 = scmp.ge.s32.totalorder %s21_s22, 10   ;;  %s1101_s16 = smov %s820_s17 }
 0x18c   : > { %s1102_s17 = smov %s947_s7  ;;  %s1103_s18 = smov %s832_s20 }
 0x18d   : > { %s1104_s19 = smov %s836_s21  ;;  %s1105_s20 = smov %s1108_s25 }
 0x18e   : > { %s1106_s21 = smov %s1112_s26  ;;  %20 = sbr.rel (!%p18_p3) target bundleno = 7 (0x7), region = 98 }
 0x193   :  { %444 = vsyncpa [#allocation3], 1 }
 0x194   :  { %446 = vsyncpa [#allocation3 + $0x1], 1 }
 0x195   :  { %447 = vsyncpa [#allocation5], 1 }
 0x196   :  { %449 = vsyncpa [#allocation5 + $0x1], 1 }

</bundles_post_ra>
